<compile_context>
chip_gen: v5e
topology: v5e:2x2
jax: 0.10.0
libtpu: 0.0.40
codegen_flags: <defaults>
</compile_context>

<pallas_src>
import functools

import jax
import jax.numpy as jnp
from jax.experimental import pallas as pl
from jax.experimental.pallas import tpu as pltpu

_LANES = 128
_MAX_LANE_GROUPS = 256          # cap on per-step unrolled VPU adds


def _classify_kernel(x_ref, wt_ref, bias_ref, o_ref, acc_ref, *, inv_hw, n_lane_groups):
    # x_ref:    (b_tile, C1, HW_TILE)  spatial slab for b_tile images
    # wt_ref:   (C1, C2)               transposed 1x1-conv weight (original dtype)
    # bias_ref: (1, C2)                f32 bias row
    # o_ref:    (b_tile, 1, C2)        lane-dense output rows
    # acc_ref:  (b_tile, C1, 128)      f32 running per-lane-group partial sums
    hi = pl.program_id(1)

    @pl.when(hi == 0)
    def _():
        acc_ref[...] = jnp.zeros_like(acc_ref)

    # Pure full-width VPU adds: fold the tile's 128-lane column groups into the
    # lane-wide accumulator.  No per-step cross-lane (XLU) reduction.
    s = acc_ref[...]
    for g in range(n_lane_groups):
        s = s + x_ref[:, :, g * _LANES:(g + 1) * _LANES].astype(jnp.float32)
    acc_ref[...] = s

    @pl.when(hi == pl.num_programs(1) - 1)
    def _():
        # One cross-lane reduce + scale per batch tile, then a lane-dense matmul.
        pooled = jnp.sum(acc_ref[...], axis=-1) * inv_hw              # (b_tile, C1) f32
        out = jnp.dot(pooled, wt_ref[...].astype(jnp.float32),
                      preferred_element_type=jnp.float32)             # (b_tile, C2)
        out = out + bias_ref[...]
        o_ref[...] = out.reshape(o_ref.shape).astype(o_ref.dtype)


def _round_up(n, m):
    return ((n + m - 1) // m) * m


def _tpu_generation():
    try:
        kind = jax.devices()[0].device_kind.lower()
    except Exception:
        return 0
    for g in (7, 6, 5, 4, 3):
        if f"v{g}" in kind:
            return g
    return 0


def _vmem_plan(gen):
    """(per-x-buffer budget bytes, number of x buffers, base vmem_limit_bytes)."""
    if gen >= 7:      # 64 MiB physical VMEM, ~3.2 TB/s HBM: 3 medium buffers
        return 8 << 20, 3, 44 << 20
    if gen == 6:      # 128 MiB physical, default scoped limit only 32 MiB
        return 14 << 20, 2, 64 << 20
    if gen == 5:      # 128 MiB physical, default scoped limit 16 MiB
        return 6 << 20, 2, 32 << 20
    return 6 << 20, 2, 32 << 20


def _choose_tiles(batch, c1, hw_pad, itemsize, per_buf_budget):
    """Pick (b_tile, hw_tile): b_tile divides batch, hw_tile is a 128-multiple divisor
    of hw_pad, and one x block stays within per_buf_budget."""
    max_elems = max(per_buf_budget // itemsize, c1 * _LANES)
    hw_cap = _MAX_LANE_GROUPS * _LANES

    # Batch tile: largest divisor of `batch` whose (lane-capped) full spatial slab fits
    # one buffer, while keeping >= 2 parallel batch steps when batch > 1 (megacore).
    b_cap = 1 if batch == 1 else max(1, batch // 2)
    b_tile = 1
    for d in range(1, batch + 1):
        if batch % d == 0 and d <= b_cap and d * c1 * min(hw_pad, hw_cap) <= max_elems:
            b_tile = d

    # Spatial tile: largest 128-lane multiple dividing hw_pad within budget / unroll cap.
    cap = min(max_elems // (b_tile * c1), hw_cap)
    hw_tile = _LANES
    t = _LANES
    while t <= hw_pad:
        if hw_pad % t == 0 and t <= cap:
            hw_tile = t
        t += _LANES
    return b_tile, hw_tile


def classify(x, weight, bias):
    """Pallas implementation of Classify.forward for a single NCHW tensor.

    x:      (B, C1, H, W)
    weight: (C2, C1) or the k=1 Conv2d weight (C2, C1, 1, 1)
    bias:   (C2,)
    returns (B, C2)
    """
    # TODO(synk): list-of-tensors input (per-tensor GAP + channel concat) not implemented.
    # TODO(synk): only k=1, g=1 conv supported; for odd k>1 pass weight[:, :, k//2, k//2].
    # TODO(synk): B==1 on v7x leaves one TensorCore idle (no cross-core HW split).
    # TODO(synk): C1 below the sublane tile height is not folded into sublanes.
    b, c1, h, w = x.shape
    if weight.ndim == 4:
        weight = weight[:, :, weight.shape[2] // 2, weight.shape[3] // 2]
    c2, c1w = weight.shape
    assert c1w == c1
    hw = h * w

    gen = _tpu_generation()
    per_buf_budget, n_x_buffers, vmem_limit = _vmem_plan(gen)

    itemsize = x.dtype.itemsize
    # Reserve the (double-buffered) resident weight/bias footprint out of the plan.
    fixed = 2 * (c1 * c2 * weight.dtype.itemsize + max(c2, _LANES) * 4)
    per_buf_budget = max(per_buf_budget - fixed // n_x_buffers, 512 * 1024)

    # Flatten spatial and zero-pad to a 128-lane multiple (zeros don't change the sum).
    x3 = x.reshape(b, c1, hw)
    hw_pad = _round_up(hw, _LANES)
    if hw_pad != hw:
        x3 = jnp.pad(x3, ((0, 0), (0, 0), (0, hw_pad - hw)))

    b_tile, hw_tile = _choose_tiles(b, c1, hw_pad, itemsize, per_buf_budget)
    n_hw = hw_pad // hw_tile
    n_lg = hw_tile // _LANES

    wt = weight.T                                         # (C1, C2); keep original dtype
    bias_row = bias.astype(jnp.float32).reshape(1, c2)

    # Total resident VMEM estimate -> scoped limit (clamped below physical).
    x_block_bytes = b_tile * c1 * hw_tile * itemsize
    acc_bytes = b_tile * c1 * _LANES * 4
    out_bytes = 2 * b_tile * max(c2, _LANES) * itemsize
    total = n_x_buffers * x_block_bytes + fixed + acc_bytes + out_bytes
    phys_cap = (56 << 20) if gen >= 7 else (112 << 20)
    vmem_limit = min(phys_cap, max(vmem_limit, int(total * 1.4) + (4 << 20)))

    kernel = functools.partial(_classify_kernel, inv_hw=1.0 / float(hw),
                               n_lane_groups=n_lg)

    x_index_map = lambda bi, hi: (bi, 0, hi)
    x_spec = pl.BlockSpec((b_tile, c1, hw_tile), x_index_map)
    if gen >= 7 and n_x_buffers != 2 and hasattr(pl, "Buffered"):
        try:  # deeper input buffering on v7x (short per-tile DMA drain time)
            x_spec = pl.BlockSpec((b_tile, c1, hw_tile), x_index_map,
                                  pipeline_mode=pl.Buffered(n_x_buffers))
        except TypeError:
            pass

    out3 = pl.pallas_call(
        kernel,
        out_shape=jax.ShapeDtypeStruct((b, 1, c2), x.dtype),
        grid=(b // b_tile, n_hw),
        in_specs=[
            x_spec,
            pl.BlockSpec((c1, c2), lambda bi, hi: (0, 0)),
            pl.BlockSpec((1, c2), lambda bi, hi: (0, 0)),
        ],
        out_specs=pl.BlockSpec((b_tile, 1, c2), lambda bi, hi: (bi, 0, 0)),
        scratch_shapes=[pltpu.VMEM((b_tile, c1, _LANES), jnp.float32)],
        compiler_params=pltpu.CompilerParams(
            dimension_semantics=("parallel", "arbitrary"),
            vmem_limit_bytes=int(vmem_limit)),
    )(x3, wt, bias_row)

    return out3.reshape(b, c2)


def _classify_ref(x, weight, bias):
    """Pure-JAX reference mirroring the PyTorch module (k=1 defaults)."""
    z = jnp.mean(x.astype(jnp.float32), axis=(2, 3))                       # (B, C1)
    out = z @ weight.astype(jnp.float32).T + bias.astype(jnp.float32)[None, :]
    return out.astype(x.dtype)


if __name__ == "__main__":
    key = jax.random.PRNGKey(0)
    kx, kw, kb = jax.random.split(key, 3)

    b, c1, h, w = 2, 4, 16, 16      # NCHW, matching the PyTorch module
    c2 = 8
    x = jax.random.normal(kx, (b, c1, h, w), dtype=jnp.float32)
    weight = 0.1 * jax.random.normal(kw, (c2, c1), dtype=jnp.float32)
    bias = 0.1 * jax.random.normal(kb, (c2,), dtype=jnp.float32)

    out = classify(x, weight, bias)
    out = jax.block_until_ready(out)

    ref = _classify_ref(x, weight, bias)
    assert out.shape == (b, c2), out.shape
    assert out.dtype == x.dtype
    assert jnp.allclose(out, ref, rtol=1e-5, atol=1e-5), "mismatch vs reference"

    print("KERNEL_OK")
</pallas_src>

<mosaic_0001>
module attributes {stable_mosaic.version = 11 : i64} {
  func.func @_classify_kernel(%arg0: i32, %arg1: i32, %arg2: memref<1x4x256xf32, #tpu.memory_space<vmem>>, %arg3: memref<4x8xf32, #tpu.memory_space<vmem>>, %arg4: memref<1x8xf32, #tpu.memory_space<vmem>>, %arg5: memref<1x1x8xf32, #tpu.memory_space<vmem>>, %arg6: memref<1x4x128xf32, #tpu.memory_space<vmem>>) attributes {dimension_semantics = [#tpu.dimension_semantics<parallel>, #tpu.dimension_semantics<arbitrary>], iteration_bounds = array<i64: 2, 1>, scalar_prefetch = 0 : i64, scratch_operands = 1 : i64, tpu.core_type = #tpu.core_type<tc>, window_params = [{transform_indices = @transform_0, window_bounds = array<i64: 1, 4, 256>}, {pipeline_mode = #tpu.pipeline_mode<synchronous>, transform_indices = @transform_1, window_bounds = array<i64: 4, 8>}, {pipeline_mode = #tpu.pipeline_mode<synchronous>, transform_indices = @transform_2, window_bounds = array<i64: 1, 8>}, {transform_indices = @transform_3, window_bounds = array<i64: 1, 1, 8>}]} {
    %c0_i32 = arith.constant 0 : i32
    %0 = arith.cmpi eq, %arg1, %c0_i32 : i32
    %1 = arith.extui %0 : i1 to i32
    %c0_i32_0 = arith.constant 0 : i32
    %2 = arith.cmpi ne, %1, %c0_i32_0 : i32
    scf.if %2 {
      %cst = arith.constant 0.000000e+00 : f32
      %12 = vector.broadcast %cst : f32 to vector<1x4x128xf32>
      %c0_13 = arith.constant 0 : index
      %c0_14 = arith.constant 0 : index
      %c0_15 = arith.constant 0 : index
      %13 = vector.load %arg6[%c0_13, %c0_14, %c0_15] : memref<1x4x128xf32, #tpu.memory_space<vmem>>, vector<1x4x128xf32>
      tpu.vector_store %arg6[%c0_13, %c0_14, %c0_15], %12 {strides = array<i32>} : memref<1x4x128xf32, #tpu.memory_space<vmem>>, vector<1x4x128xf32>,
    } else {
    }
    %c0 = arith.constant 0 : index
    %c0_1 = arith.constant 0 : index
    %c0_2 = arith.constant 0 : index
    %3 = vector.load %arg6[%c0, %c0_1, %c0_2] : memref<1x4x128xf32, #tpu.memory_space<vmem>>, vector<1x4x128xf32>
    %c0_3 = arith.constant 0 : index
    %c0_4 = arith.constant 0 : index
    %c0_5 = arith.constant 0 : index
    %4 = vector.load %arg2[%c0_3, %c0_4, %c0_5] : memref<1x4x256xf32, #tpu.memory_space<vmem>>, vector<1x4x128xf32>
    %5 = arith.addf %3, %4 : vector<1x4x128xf32>
    %c0_6 = arith.constant 0 : index
    %c0_7 = arith.constant 0 : index
    %c128 = arith.constant 128 : index
    %6 = vector.load %arg2[%c0_6, %c0_7, %c128] : memref<1x4x256xf32, #tpu.memory_space<vmem>>, vector<1x4x128xf32>
    %7 = arith.addf %5, %6 : vector<1x4x128xf32>
    %c0_8 = arith.constant 0 : index
    %c0_9 = arith.constant 0 : index
    %c0_10 = arith.constant 0 : index
    %8 = vector.load %arg6[%c0_8, %c0_9, %c0_10] : memref<1x4x128xf32, #tpu.memory_space<vmem>>, vector<1x4x128xf32>
    tpu.vector_store %arg6[%c0_8, %c0_9, %c0_10], %7 {strides = array<i32>} : memref<1x4x128xf32, #tpu.memory_space<vmem>>, vector<1x4x128xf32>,
    %c0_i32_11 = arith.constant 0 : i32
    %9 = arith.cmpi eq, %arg1, %c0_i32_11 : i32
    %10 = arith.extui %9 : i1 to i32
    %c0_i32_12 = arith.constant 0 : i32
    %11 = arith.cmpi ne, %10, %c0_i32_12 : i32
    scf.if %11 {
      %c0_13 = arith.constant 0 : index
      %c0_14 = arith.constant 0 : index
      %c0_15 = arith.constant 0 : index
      %12 = vector.load %arg6[%c0_13, %c0_14, %c0_15] : memref<1x4x128xf32, #tpu.memory_space<vmem>>, vector<1x4x128xf32>
      %cst = arith.constant dense<0.000000e+00> : vector<1x4xf32>
      %13 = vector.multi_reduction <add>, %12, %cst [2] : vector<1x4x128xf32> to vector<1x4xf32>
      %cst_16 = arith.constant 3.906250e-03 : f32
      %14 = vector.broadcast %cst_16 : f32 to vector<1x4xf32>
      %15 = arith.mulf %13, %14 : vector<1x4xf32>
      %c0_17 = arith.constant 0 : index
      %c0_18 = arith.constant 0 : index
      %16 = vector.load %arg3[%c0_17, %c0_18] : memref<4x8xf32, #tpu.memory_space<vmem>>, vector<4x8xf32>
      %cst_19 = arith.constant dense<0.000000e+00> : vector<1x8xf32>
      %17 = tpu.matmul %15, %16, %cst_19 {dimension_numbers = #tpu.dot_dimension_numbers<[1], [0], [0], [1], [0, 0, 1, 1], [], []>} : vector<1x4xf32>, vector<4x8xf32>, vector<1x8xf32> -> vector<1x8xf32>
      %c0_20 = arith.constant 0 : index
      %c0_21 = arith.constant 0 : index
      %18 = vector.load %arg4[%c0_20, %c0_21] : memref<1x8xf32, #tpu.memory_space<vmem>>, vector<1x8xf32>
      %19 = arith.addf %17, %18 : vector<1x8xf32>
      %20 = vector.shape_cast %19 : vector<1x8xf32> to vector<1x1x8xf32>
      %c0_22 = arith.constant 0 : index
      %c0_23 = arith.constant 0 : index
      %c0_24 = arith.constant 0 : index
      %21 = vector.load %arg5[%c0_22, %c0_23, %c0_24] : memref<1x1x8xf32, #tpu.memory_space<vmem>>, vector<1x1x8xf32>
      tpu.vector_store %arg5[%c0_22, %c0_23, %c0_24], %20 {strides = array<i32>} : memref<1x1x8xf32, #tpu.memory_space<vmem>>, vector<1x1x8xf32>,
    } else {
    }
    return
  }
  func.func @transform_0(%arg0: i32, %arg1: i32) -> (i32, i32, i32) {
    %c0_i32 = arith.constant 0 : i32
    %c0_i32_0 = arith.constant 0 : i32
    return %arg0, %c0_i32, %arg1 : i32, i32, i32
  }
  func.func @transform_1(%arg0: i32, %arg1: i32) -> (i32, i32) {
    %c0_i32 = arith.constant 0 : i32
    %c0_i32_0 = arith.constant 0 : i32
    %c0_i32_1 = arith.constant 0 : i32
    return %c0_i32, %c0_i32_0 : i32, i32
  }
  func.func @transform_2(%arg0: i32, %arg1: i32) -> (i32, i32) {
    %c0_i32 = arith.constant 0 : i32
    %c0_i32_0 = arith.constant 0 : i32
    %c0_i32_1 = arith.constant 0 : i32
    return %c0_i32, %c0_i32_0 : i32, i32
  }
  func.func @transform_3(%arg0: i32, %arg1: i32) -> (i32, i32, i32) {
    %c0_i32 = arith.constant 0 : i32
    %c0_i32_0 = arith.constant 0 : i32
    %c0_i32_1 = arith.constant 0 : i32
    return %arg0, %c0_i32, %c0_i32_0 : i32, i32, i32
  }
}

</mosaic_0001>

<bundles_post_ra>
// kernel: tpu_custom_call.1
= control target key start
LH: loop header
LB: loop body
LE: loop exit
PB: predicated region body
PF: predicated region fallthrough
CT: control target
= control target key end

     0   :  { %8 = vsyncpa [#allocation4], 0  ;;  %s787_s0 = inlined_call_operand.hbm [shape: f32[2,4,256], index: 0, kind: input, shape index: {}]   ;;  %s788_s1 = inlined_call_operand.hbm [shape: f32[4,8], index: 1, kind: input, shape index: {}]   ;;  %s789_s2 = inlined_call_operand.vmem [shape: f32[1,8], index: 2, kind: input, shape index: {}]   ;;  %s790_s3 = inlined_call_operand.hbm [shape: f32[2,1,8], index: 3, kind: output, shape index: {}]  }
   0x1   :  { %10 = vsyncpa [#allocation4 + $0x1], 0 }
   0x2   :  { %11 = vsyncpa [#allocation7], 0 }
   0x3   :  { %12 = vsyncpa [#allocation5], 0 }
   0x4   :  { %14 = vsyncpa [#allocation5 + $0x1], 0  ;;  %s634_s12 = smov 0   ;;  %s636_s13 = smov 0  }
   0x5   :  { %s638_s14 = smov 0   ;;  %s640_s15 = smov 0  }
   0x6   :  { %s642_s16 = smov 0   ;;  %s644_s17 = smov 0  }
   0x7 LB: > { %s374_s18 = sadd.s32 4294967295, %s610_s17   ;;  %s375_s19 = sadd.s32 4294967294, %s610_s17   ;;  %s610_s17 = sphi %s644_s17, %s20_s17   ;;  %s606_s16 = sphi %s642_s16, %s802_s16   ;;  %s602_s15 = sphi %s640_s15, %s801_s15   ;;  %s598_s14 = sphi %s638_s14, %s800_s14   ;;  %s594_s13 = sphi %s636_s13, %s799_s13   ;;  %s590_s12 = sphi %s634_s12, %s798_s12  }
   0x8   : > { %p54_p0 = scmp.ne.s32.totalorder %s594_s13, %s590_s12  ;;  %p668_p1 = scmp.eq.s32.totalorder %s374_s18, 0 }
   0x9   : > { %p672_p2 = scmp.eq.s32.totalorder %s374_s18, 1  ;;  %p126_p3 = scmp.eq.s32.totalorder %s375_s19, 1 }
   0xa   : > { %p678_p4 = por %p668_p1, %p54_p0  ;;  %p376_p5 = scmp.ge.s32.totalorder %s610_s17, 1 }
   0xb   : > { %p683_p6 = por %p126_p3, %p54_p0  ;;  %p133_p7 = scmp.lt.s32.totalorder %s610_s17, 3 }
   0xc   : > { %s145_s26 = sshll.u32 %s788_s1, 4  ;;  %p378_p9 = scmp.ge.s32.totalorder %s610_s17, 2  ;;  %s146_s26 = int_to_ptr.hbm [resolvable:$true] %s145_s26 }
   0xd   : > { %p691_p8 = pnand %p376_p5, %p133_p7  ;;  %s612_s28 = smov [#allocation6]  }
   0xe   : > { %s147_s29 = sshll.u32 %s612_s28, 4  ;;  %s32_s30 = sadd.s32 1, %s606_s16  ;;  %s148_s29 = int_to_ptr.vmem [resolvable:$true] %s147_s29 }
   0xf   : > { %p398_p10 = pneg %p691_p8  ;;  %p34_p12 = scmp.ge.s32.totalorder %s32_s30, 2 }
  0x10   : > { %s41_s4 = sadd.s32 1, %s598_s14  ;;  %p48_p13 = scmp.ne.s32.totalorder %s598_s14, %s594_s13 }
  0x11   : > { %p399_p11 = pnand %p398_p10, %p668_p1  ;;  %p49_p0 = scmp.eq.s32.totalorder %s610_s17, 0 }
  0x12   : > { %s804_s30 = smov (%p34_p12, %s32_s30), 0  ;;  %p713_p5 = por %p672_p2, %p48_p13 }
  0x13   : > { %401 = dma.hbm_to_vmem [thread:$0]  (!%p399_p11), %s146_s26, 64, %s148_s29, [#allocation7]  }
  0x14   : > { %p707_p3 = por %p49_p0, %p48_p13  ;;  %s36_s7 = ssub.s32 %s606_s16, %s804_s30 }
  0x15   : > { %p411_p7 = scmp.lt.s32.totalorder %s610_s17, 2  ;;  %p39_p10 = scmp.eq.s32.totalorder %s36_s7, 0 }
  0x16   : > { %s161_s8 = sand.u32 1, %s598_s14   ;;  %s389_s11 = sshll.u32 %s606_s16, 3 }
  0x17   : > { %s379_s9 = sshll.u32 %s161_s8, 3  ;;  %s172_s24 = scalar_lea.hbm %s787_s0, %s389_s11 }
  0x18   : > { %s722_s10 = scalar_select %p39_p10, %s598_s14, %s41_s4  }
  0x19   : > { %s165_s25 = scalar_lea.vmem [#allocation3], %s379_s9  ;;  %s174_s21 = sshll.u32 %s172_s24, 4  ;;  %s175_s21 = int_to_ptr.hbm [resolvable:$true] %s174_s21 }
  0x1a   : > { %s176_s26 = sshll.u32 %s165_s25, 4  ;;  %p403_p2 = pnand %p411_p7, %p707_p3  ;;  %s177_s26 = int_to_ptr.vmem [resolvable:$true] %s176_s26 }
  0x1b   : > { %s162_s28 = scalar_lea.sflag [#allocation4], %s161_s8  ;;  %185 = sbr.rel (%p691_p8) target bundleno = 308 (0x134), region = 32 }
  0x1c   : > { %405 = dma.hbm_to_vmem [thread:$0]  (!%p403_p2), %s175_s21, 128, %s177_s26, %s162_s28  }
  0x1d   : > { %s733_s29 = sand.u32 (!%p691_p8), 1, %s594_s13  }
  0x1e   : > { %s383_s4 = sshll.u32 (!%p691_p8), %s733_s29, 3  ;;  %s188_s7 = scalar_lea.sflag (!%p691_p8), [#allocation4], %s733_s29 }
  0x1f   : > { %s191_s9 = scalar_lea.vmem (!%p691_p8), [#allocation3], %s383_s4 }
  0x20   : > { %577 = dma.done.wait (%p678_p4), %s188_s7, 128  }
  0x21   : > { %579 = vsyncadd (%p678_p4), %s188_s7, 4294967168 }
  0x22   : > { %581 = dma.done.wait (%p668_p1), [#allocation7], 64  }
  0x23   : > { %583 = vsyncadd (%p668_p1), [#allocation7], 4294967232  ;;  %v613_v0 = vmov 0.0   ;;  %v226_v1 = vld [vmem:[%s191_s9] sm:$0xf]  ;;  %vm235_vm0 = vcmask 1043456   ;;  %v243_v9 = vlaneseq  ;;  %s283_s27 = scalar_lea.hbm %s790_s3, %s602_s15 }
  0x24   : > { %224 = vst [vmem:[#allocation2] sm:$0xf] %v613_v0  ;;  %v228_v3 = vld [vmem:[%s191_s9 + $0x4] sm:$0xf]  ;;  %v240_v8 = vld [vmem:[#allocation6] sm:$0xf] }
  0x25   : > { %385 = vmatpush.msk.msra.mxu0 %vm235_vm0, %v240_v8  ;;  %v244_v10 = vand.u32 127, %v243_v9  ;;  %vm246_vm1 = vcmask 31744   ;;  %v241_v14 = vld [vmem:[%s789_s2] sm:$0x1]  ;;  %s218_s11 = scalar_lea.vmem [#allocation8], %s733_s29  ;;  %s287_s19 = sshll.u32 %s283_s27, 4  ;;  %s288_s19 = int_to_ptr.hbm [resolvable:$true] %s287_s19 }
  0x26   : > { %s285_s18 = sshll.u32 %s218_s11, 4  ;;  %vm272_vm2 = vcmask 57344   ;;  %s275_s24 = scalar_lea.sflag [#allocation5], %s733_s29  ;;  %s286_s18 = int_to_ptr.vmem [resolvable:$true] %s285_s18 }
  0x27   : > { %s538_s25 = sshra.s32 %s288_s19, 4  ;;  %s544_s28 = scalar_lea.hbm %s790_s3, 2  ;;  %s539_s25 = int_to_ptr.hbm [resolvable:$true] %s538_s25 }
  0x28   : > { %s540_s26 = scalar_lea.hbm %s539_s25, 1  ;;  %p545_p11 = scmp.lt.s32.totalorder %s539_s25, %s790_s3 }
  0x29   : > { %p541_p1 = scmp.ne.s32.totalorder %s539_s25, %s540_s26  ;;  %p546_p12 = scmp.lt.s32.totalorder %s544_s28, %s540_s26 }
  0x2b   : > { %v225_v2 = vld [vmem:[#allocation2] sm:$0xf]  ;;  %p542_p4 = pnand %p541_p1, %p713_p5  ;;  %p547_p13 = por %p546_p12, %p545_p11 }
  0x2c   : > { %v227_v4 = vadd.f32 %v226_v1, %v225_v2 }
  0x2d   : > { %p543_p8 = pneg %p542_p4 }
  0x2e   : > { %v229_v5 = vadd.f32 %v228_v3, %v227_v4 }
  0x2f   : > { %p548_p0 = pnand %p547_p13, %p543_p8 }
  0x30   : > { %230 = vst [vmem:[#allocation2] sm:$0xf] %v229_v5 }
  0x37   : > { %v234_v6 = vld [vmem:[#allocation2] sm:$0xf] }
  0x38   : > { %v236_v7 = vsel %vm235_vm0, %v234_v6, 0.0 }
  0x39   : > { %237 = vadd.xlane.f32.xlu0 %v236_v7 }
  0xac   : > { %v238_v11 = vpop.xlane.xlu0 %237 }
  0xad   : > { %v239_v12 = vmul.f32 0.00390625, %v238_v11 }
  0xaf   : > { %v245_v13 = vperm.slane %v239_v12, %v244_v10 }
  0xb1   : > { %386 = vmatmul.msk.f32.vlgmr.msra.gmra.mxu0 %vm246_vm1, %v245_v13 }
 0x12e   : > { %v269_v15 = vpop.f32.mrf.mxu0 }
 0x12f   : > { %v270_v16 = vadd.f32 %v269_v15, %v241_v14 }
 0x131   : > { %273 = vst.msk [vmem:[%s218_s11] sm:$0x1] %vm272_vm2, %v270_v16 }
 0x132   : > { %551 = shalt.err (!%p548_p0)
}
 0x133   : > { %396 = dma.vmem_to_hbm [thread:$0]  (%p713_p5), %s286_s18, 16, %s288_s19, %s275_s24  }
 0x134 PF: > { %s299_s29 = sand.u32 1, %s590_s12   ;;  %p407_p3 = pnand %p378_p9, %p683_p6 }
 0x135   : > { %s300_s9 = scalar_lea.sflag [#allocation5], %s299_s29 }
 0x136   : > { %p408_p7 = pneg %p407_p3 }
 0x138   : > { %585 = dma.done.wait (%p408_p7), %s300_s9, 16  }
 0x139   : > { %587 = vsyncadd (%p408_p7), %s300_s9, 4294967280  ;;  %s20_s17 = sadd.s32 1, %s610_s17   ;;  %s798_s12 = smov %s594_s13 }
 0x13a   : > { %p17_p10 = scmp.ge.s32.totalorder %s20_s17, 4   ;;  %s799_s13 = smov %s598_s14 }
 0x13b   : > { %s800_s14 = smov %s722_s10  ;;  %s801_s15 = smov %s606_s16 }
 0x13c   : > { %s802_s16 = smov %s804_s30  ;;  %19 = sbr.rel (!%p17_p10) target bundleno = 7 (0x7), region = 89 }
 0x141   :  { %305 = vsyncpa [#allocation4], 1 }
 0x142   :  { %307 = vsyncpa [#allocation4 + $0x1], 1 }
 0x143   :  { %308 = vsyncpa [#allocation7], 1 }
 0x144   :  { %309 = vsyncpa [#allocation5], 1 }
 0x145   :  { %311 = vsyncpa [#allocation5 + $0x1], 1 }

</bundles_post_ra>
